<compile_context>
chip_gen: v6e
topology: v6e:2x2x1
jax: 0.10.0
libtpu: 0.0.40
codegen_flags: <defaults>
</compile_context>

<pallas_src>
import math

import jax
import jax.numpy as jnp
from jax.experimental import pallas as pl
from jax.experimental.pallas import tpu as pltpu

_LANE = 128                    # vreg lane width
_SUBLANE = 8                   # vreg sublane height (f32)
_NEG_BIG = -1e30               # bias for padded output columns (exp underflows to 0)
_H_CHUNK = 512                 # hidden-axis chunk width when h_p is large
_VMEM_BUDGET = 48 * 1024 * 1024  # conservative: leaves headroom on v7x's 64 MiB/TC


def _round_up(n, m):
    return ((n + m - 1) // m) * m


def mlp_kernel(x_ref, w1_ref, b1_ref, w2_ref, b2_ref, o_ref):
    # x_ref:  (tm, C_in_p)   bf16 tile of node features (lane-dense, streamed)
    # w1_ref: (C_in_p, H_p)  bf16 first-layer weight, VMEM-resident
    # b1_ref: (1, H_p)       f32 first-layer bias (zero-padded)
    # w2_ref: (H_p, C_out_p) bf16 second-layer weight, VMEM-resident
    # b2_ref: (1, C_out_p)   f32 second-layer bias (-1e30 on padded columns)
    # o_ref:  (tm, C_out_p)  f32 log-softmax output tile (lane-dense store)
    x = x_ref[...]
    h_p = w1_ref.shape[1]

    if h_p <= 2048:
        # Single-shot: materialize the full (tm, h_p) hidden activation.
        h = jnp.dot(x, w1_ref[...], preferred_element_type=jnp.float32) + b1_ref[...]
        h = jnp.maximum(h, 0.0).astype(jnp.bfloat16)
        z = jnp.dot(h, w2_ref[...], preferred_element_type=jnp.float32) + b2_ref[...]
    else:
        # Chunk the hidden axis so the live intermediate stays bounded.
        z = jnp.zeros((x.shape[0], w2_ref.shape[1]), jnp.float32)
        for c0 in range(0, h_p, _H_CHUNK):
            c1 = c0 + _H_CHUNK
            hc = jnp.dot(x, w1_ref[:, c0:c1], preferred_element_type=jnp.float32)
            hc = jnp.maximum(hc + b1_ref[:, c0:c1], 0.0).astype(jnp.bfloat16)
            z = z + jnp.dot(hc, w2_ref[c0:c1, :], preferred_element_type=jnp.float32)
        z = z + b2_ref[...]

    # log_softmax over the feature (last) axis == PyTorch dim=1.  Padded
    # columns carry z == -1e30: they never win the max and exp() -> 0, so the
    # normalization over the real columns is exact.
    m = jnp.max(z, axis=-1, keepdims=True)
    lse = m + jnp.log(jnp.sum(jnp.exp(z - m), axis=-1, keepdims=True))
    o_ref[...] = (z - lse).astype(o_ref.dtype)


@jax.jit
def mlp_pallas(x, w1, b1, w2, b2):
    N, c_in = x.shape
    h_dim = w1.shape[1]
    c_out = w2.shape[1]

    bf16, f32 = jnp.bfloat16, jnp.float32

    # Lane-dense padded feature dims; rows padded only to the sublane boundary.
    c_in_p = _round_up(c_in, _LANE)
    h_p = _round_up(h_dim, _LANE)
    c_out_p = _round_up(c_out, _LANE)
    n_rows = _round_up(N, _SUBLANE)

    # --- operand prep (skipped / reduced when already aligned; fuses under jit) ---
    if (n_rows, c_in_p) == (N, c_in):
        x_p = x.astype(bf16)
    else:
        x_p = jnp.zeros((n_rows, c_in_p), bf16).at[:N, :c_in].set(x.astype(bf16))

    if w1.shape == (c_in_p, h_p):
        w1_p = w1.astype(bf16)
    else:
        w1_p = jnp.zeros((c_in_p, h_p), bf16).at[:c_in, :h_dim].set(w1.astype(bf16))

    if w2.shape == (h_p, c_out_p):
        w2_p = w2.astype(bf16)
    else:
        w2_p = jnp.zeros((h_p, c_out_p), bf16).at[:h_dim, :c_out].set(w2.astype(bf16))

    b1_p = jnp.zeros((1, h_p), f32).at[:, :h_dim].set(b1.reshape(1, -1).astype(f32))
    b2_p = jnp.full((1, c_out_p), _NEG_BIG, f32).at[:, :c_out].set(
        b2.reshape(1, -1).astype(f32))

    # --- node-tile selection against a conservative VMEM budget -----------------
    weight_bytes = 2 * (c_in_p * h_p + h_p * c_out_p) + 4 * (h_p + c_out_p)
    live_h = min(h_p, _H_CHUNK) if h_p > 2048 else h_p

    def vmem_need(t):
        return (weight_bytes
                + 2 * t * c_in_p * 2      # double-buffered x tiles (bf16)
                + 2 * t * c_out_p * 4     # double-buffered output tiles (f32)
                + t * live_h * 4          # f32 hidden intermediate
                + t * live_h * 2          # bf16 copy fed to the 2nd dot
                + t * c_out_p * 4)        # f32 logits / accumulator

    tm = _SUBLANE
    for cand in (1024, 512, 256, 128, 64, 32, 16, 8):
        if vmem_need(cand) <= _VMEM_BUDGET:
            tm = cand
            break
    tm = min(tm, n_rows)
    # Give megacore (v7x) at least 2 parallel grid steps when the data allows it.
    if n_rows > _SUBLANE and -(-n_rows // tm) < 2:
        tm = _round_up(-(-n_rows // 2), _SUBLANE)

    grid = (-(-n_rows // tm),)            # partial last tile handled by Pallas
    vmem_limit = int(min(64 << 20, vmem_need(tm) + (8 << 20)))

    cost = pl.CostEstimate(
        flops=2 * n_rows * (c_in_p * h_p + h_p * c_out_p),
        transcendentals=2 * n_rows * c_out_p,
        bytes_accessed=(x_p.size * 2 + w1_p.size * 2 + w2_p.size * 2
                        + b1_p.size * 4 + b2_p.size * 4
                        + n_rows * c_out_p * 4),
    )

    # Full-array VMEM spec: DMA'd once before the grid runs, not double-buffered.
    resident = pl.BlockSpec(memory_space=pltpu.MemorySpace.VMEM)

    out_p = pl.pallas_call(
        mlp_kernel,
        out_shape=jax.ShapeDtypeStruct((n_rows, c_out_p), f32),
        grid_spec=pltpu.PrefetchScalarGridSpec(
            num_scalar_prefetch=0,
            grid=grid,
            in_specs=[
                pl.BlockSpec((tm, c_in_p), lambda i: (i, 0)),  # streamed node tiles
                resident,   # w1
                resident,   # b1
                resident,   # w2
                resident,   # b2
            ],
            out_specs=pl.BlockSpec((tm, c_out_p), lambda i: (i, 0)),
        ),
        compiler_params=pltpu.CompilerParams(
            dimension_semantics=("parallel",),
            vmem_limit_bytes=vmem_limit),
        cost_estimate=cost,
    )(x_p, w1_p, b1_p, w2_p, b2_p)

    # Drop row/column padding (fuses into the same executable under jit).
    return out_p[:N, :c_out]


def glorot_init(key, fan_in, fan_out):
    # matches the PyTorch glorot(): uniform(-stdv, stdv), stdv = sqrt(6/(fi+fo))
    stdv = math.sqrt(6.0 / (fan_in + fan_out))
    return jax.random.uniform(key, (fan_in, fan_out), jnp.float32, -stdv, stdv)


def mlp_reference(x, w1, b1, w2, b2):
    h = jnp.maximum(x @ w1 + b1, 0.0)
    z = h @ w2 + b2
    return jax.nn.log_softmax(z, axis=1)


if __name__ == "__main__":
    # Small shapes consistent with the module: N nodes, feature dims.
    N, in_channels, inter_channels, out_channels = 16, 8, 32, 8

    key = jax.random.PRNGKey(0)
    kx, k1, k2 = jax.random.split(key, 3)

    x = jax.random.normal(kx, (N, in_channels), jnp.float32)

    # Deterministic parameter init (glorot weights, zero biases), as in __init__.
    w1 = glorot_init(k1, in_channels, inter_channels)
    b1 = jnp.zeros((inter_channels,), jnp.float32)
    w2 = glorot_init(k2, inter_channels, out_channels)
    b2 = jnp.zeros((out_channels,), jnp.float32)

    out = mlp_pallas(x, w1, b1, w2, b2)
    out = jax.block_until_ready(out)

    ref = mlp_reference(x, w1, b1, w2, b2)
    assert out.shape == (N, out_channels)
    # bf16 storage of x/W1/W2 -> loosened tolerance (per perf review).
    assert jnp.allclose(out, ref, atol=2e-2, rtol=2e-2), float(
        jnp.max(jnp.abs(out - ref)))

    print("KERNEL_OK")
</pallas_src>

<mosaic_0001>
module attributes {stable_mosaic.version = 11 : i64} {
  func.func @mlp_kernel(%arg0: i32, %arg1: memref<8x128xbf16, #tpu.memory_space<vmem>>, %arg2: memref<128x128xbf16, #tpu.memory_space<vmem>>, %arg3: memref<1x128xf32, #tpu.memory_space<vmem>>, %arg4: memref<128x128xbf16, #tpu.memory_space<vmem>>, %arg5: memref<1x128xf32, #tpu.memory_space<vmem>>, %arg6: memref<8x128xf32, #tpu.memory_space<vmem>>) attributes {dimension_semantics = [#tpu.dimension_semantics<parallel>], iteration_bounds = array<i64: 2>, scalar_prefetch = 0 : i64, scratch_operands = 0 : i64, tpu.core_type = #tpu.core_type<tc>, window_params = [{transform_indices = @transform_0, window_bounds = array<i64: 8, 128>}, {pipeline_mode = #tpu.pipeline_mode<synchronous>, transform_indices = @transform_1, window_bounds = array<i64: 128, 128>}, {pipeline_mode = #tpu.pipeline_mode<synchronous>, transform_indices = @transform_2, window_bounds = array<i64: 1, 128>}, {pipeline_mode = #tpu.pipeline_mode<synchronous>, transform_indices = @transform_3, window_bounds = array<i64: 128, 128>}, {pipeline_mode = #tpu.pipeline_mode<synchronous>, transform_indices = @transform_4, window_bounds = array<i64: 1, 128>}, {transform_indices = @transform_5, window_bounds = array<i64: 8, 128>}]} {
    %c0 = arith.constant 0 : index
    %c0_0 = arith.constant 0 : index
    %0 = vector.load %arg1[%c0, %c0_0] : memref<8x128xbf16, #tpu.memory_space<vmem>>, vector<8x128xbf16>
    %c0_1 = arith.constant 0 : index
    %c0_2 = arith.constant 0 : index
    %1 = vector.load %arg2[%c0_1, %c0_2] : memref<128x128xbf16, #tpu.memory_space<vmem>>, vector<128x128xbf16>
    %cst = arith.constant dense<0.000000e+00> : vector<8x128xf32>
    %2 = tpu.matmul %0, %1, %cst {dimension_numbers = #tpu.dot_dimension_numbers<[1], [0], [0], [1], [0, 0, 1, 1], [], []>} : vector<8x128xbf16>, vector<128x128xbf16>, vector<8x128xf32> -> vector<8x128xf32>
    %c0_3 = arith.constant 0 : index
    %c0_4 = arith.constant 0 : index
    %3 = vector.load %arg3[%c0_3, %c0_4] : memref<1x128xf32, #tpu.memory_space<vmem>>, vector<1x128xf32>
    %4 = vector.broadcast %3 : vector<1x128xf32> to vector<8x128xf32>
    %5 = arith.addf %2, %4 : vector<8x128xf32>
    %cst_5 = arith.constant 0.000000e+00 : f32
    %6 = vector.broadcast %cst_5 : f32 to vector<8x128xf32>
    %7 = arith.maximumf %5, %6 : vector<8x128xf32>
    %8 = arith.truncf %7 : vector<8x128xf32> to vector<8x128xbf16>
    %c0_6 = arith.constant 0 : index
    %c0_7 = arith.constant 0 : index
    %9 = vector.load %arg4[%c0_6, %c0_7] : memref<128x128xbf16, #tpu.memory_space<vmem>>, vector<128x128xbf16>
    %cst_8 = arith.constant dense<0.000000e+00> : vector<8x128xf32>
    %10 = tpu.matmul %8, %9, %cst_8 {dimension_numbers = #tpu.dot_dimension_numbers<[1], [0], [0], [1], [0, 0, 1, 1], [], []>} : vector<8x128xbf16>, vector<128x128xbf16>, vector<8x128xf32> -> vector<8x128xf32>
    %c0_9 = arith.constant 0 : index
    %c0_10 = arith.constant 0 : index
    %11 = vector.load %arg5[%c0_9, %c0_10] : memref<1x128xf32, #tpu.memory_space<vmem>>, vector<1x128xf32>
    %12 = vector.broadcast %11 : vector<1x128xf32> to vector<8x128xf32>
    %13 = arith.addf %10, %12 : vector<8x128xf32>
    %cst_11 = arith.constant dense<0xFF800000> : vector<8xf32>
    %14 = vector.multi_reduction <maximumf>, %13, %cst_11 [1] : vector<8x128xf32> to vector<8xf32>
    %15 = vector.shape_cast %14 : vector<8xf32> to vector<8x1xf32>
    %16 = vector.broadcast %15 : vector<8x1xf32> to vector<8x128xf32>
    %17 = arith.subf %13, %16 : vector<8x128xf32>
    %18 = math.exp %17 : vector<8x128xf32>
    %cst_12 = arith.constant dense<0.000000e+00> : vector<8xf32>
    %19 = vector.multi_reduction <add>, %18, %cst_12 [1] : vector<8x128xf32> to vector<8xf32>
    %20 = vector.shape_cast %19 : vector<8xf32> to vector<8x1xf32>
    %21 = math.log %20 : vector<8x1xf32>
    %22 = arith.addf %15, %21 : vector<8x1xf32>
    %23 = vector.broadcast %22 : vector<8x1xf32> to vector<8x128xf32>
    %24 = arith.subf %13, %23 : vector<8x128xf32>
    %c0_13 = arith.constant 0 : index
    %c0_14 = arith.constant 0 : index
    %25 = vector.load %arg6[%c0_13, %c0_14] : memref<8x128xf32, #tpu.memory_space<vmem>>, vector<8x128xf32>
    tpu.vector_store %arg6[%c0_13, %c0_14], %24 {strides = array<i32>} : memref<8x128xf32, #tpu.memory_space<vmem>>, vector<8x128xf32>,
    return
  }
  func.func @transform_0(%arg0: i32) -> (i32, i32) {
    %c0_i32 = arith.constant 0 : i32
    %c0_i32_0 = arith.constant 0 : i32
    return %arg0, %c0_i32 : i32, i32
  }
  func.func @transform_1(%arg0: i32) -> (i32, i32) {
    %c0_i32 = arith.constant 0 : i32
    %c0_i32_0 = arith.constant 0 : i32
    %c0_i32_1 = arith.constant 0 : i32
    return %c0_i32, %c0_i32_0 : i32, i32
  }
  func.func @transform_2(%arg0: i32) -> (i32, i32) {
    %c0_i32 = arith.constant 0 : i32
    %c0_i32_0 = arith.constant 0 : i32
    %c0_i32_1 = arith.constant 0 : i32
    return %c0_i32, %c0_i32_0 : i32, i32
  }
  func.func @transform_3(%arg0: i32) -> (i32, i32) {
    %c0_i32 = arith.constant 0 : i32
    %c0_i32_0 = arith.constant 0 : i32
    %c0_i32_1 = arith.constant 0 : i32
    return %c0_i32, %c0_i32_0 : i32, i32
  }
  func.func @transform_4(%arg0: i32) -> (i32, i32) {
    %c0_i32 = arith.constant 0 : i32
    %c0_i32_0 = arith.constant 0 : i32
    %c0_i32_1 = arith.constant 0 : i32
    return %c0_i32, %c0_i32_0 : i32, i32
  }
  func.func @transform_5(%arg0: i32) -> (i32, i32) {
    %c0_i32 = arith.constant 0 : i32
    %c0_i32_0 = arith.constant 0 : i32
    return %arg0, %c0_i32 : i32, i32
  }
}

</mosaic_0001>

<bundles_post_ra>
// kernel: mlp_pallas.1
= control target key start
LH: loop header
LB: loop body
LE: loop exit
PB: predicated region body
PF: predicated region fallthrough
CT: control target
= control target key end

     0   :  { %s666_s18 = smov 0   ;;  %s745_s0 = inlined_call_operand.vmem [shape: bf16[16,128], index: 0, kind: input, shape index: {}]   ;;  %s746_s1 = inlined_call_operand.vmem [shape: bf16[128,128], index: 1, kind: input, shape index: {}]   ;;  %s747_s2 = inlined_call_operand.vmem [shape: f32[1,128], index: 2, kind: input, shape index: {}]   ;;  %s748_s3 = inlined_call_operand.vmem [shape: bf16[128,128], index: 3, kind: input, shape index: {}]   ;;  %s749_s4 = inlined_call_operand.vmem [shape: f32[1,128], index: 4, kind: input, shape index: {}]   ;;  %s750_s5 = inlined_call_operand.vmem [shape: f32[16,128], index: 5, kind: output, shape index: {}]  }
   0x1 LB: > { %s511_s19 = sadd.s32 4294967295, %s632_s18   ;;  %p515_p0 = scmp.ge.s32.totalorder %s632_s18, 1  ;;  %s632_s18 = sphi %s666_s18, %s15_s18  }
   0x2   : > { %p186_p1 = scmp.lt.s32.totalorder %s632_s18, 3 }
   0x4   : > { %p187_p2 = pnand %p515_p0, %p186_p1 }
   0x5   : > { %p212_p3 = scmp.lt.s32.totalorder (!%p187_p2), %s511_s19, 1 }
   0x6   : > { %190 = sbr.rel (%p187_p2) target bundleno = 753 (0x2f1), region = 40 }
   0xb   : > { %v606_v0 = vld [vmem:[%s746_s1 + $0x38] sm:$0xff]   ;;  %v634_v1 = vmov 0.0   ;;  %v607_v2 = vld [vmem:[%s746_s1 + $0x30] sm:$0xff]   ;;  %vm635_vm0 = vmmov 0   ;;  %v608_v3 = vld [vmem:[%s746_s1 + $0x28] sm:$0xff]   ;;  %s752_s19 = smov (!%p212_p3, %s511_s19), 1 }
   0xc   : > { %556 = vmatprep.subr.bf16.mxu0 %v634_v1  ;;  %576 = vmatprep.subr.bf16.mxu1 %v634_v1  ;;  %v614_v4 = vld [vmem:[%s748_s3 + $0x38] sm:$0xff]   ;;  %v609_v5 = vld [vmem:[%s746_s1 + $0x20] sm:$0xff]   ;;  %v615_v6 = vld [vmem:[%s748_s3 + $0x30] sm:$0xff]   ;;  %s516_s21 = sshll.u32 %s752_s19, 2  ;;  %s517_s12 = sshll.u32 %s752_s19, 3 }
   0xd   : > { %557 = vmatpush3.bf16.msra.mxu0 %v606_v0  ;;  %572 = vmatprep.mubr.msk.bf16.mxu0 %vm635_vm0, %v634_v1  ;;  %v610_v7 = vld [vmem:[%s746_s1 + $0x18] sm:$0xff]   ;;  %v616_v8 = vld [vmem:[%s748_s3 + $0x28] sm:$0xff]   ;;  %v611_v9 = vld [vmem:[%s746_s1 + $0x10] sm:$0xff]   ;;  %s215_s26 = scalar_lea.vmem %s745_s0, %s516_s21  ;;  %s219_s15 = scalar_lea.vmem %s750_s5, %s517_s12 }
   0xe   : > { %558 = vmatprep.subr.bf16.mxu0 %v634_v1  ;;  %592 = vmatprep.mubr.msk.bf16.mxu1 %vm635_vm0, %v634_v1  ;;  %v617_v10 = vld [vmem:[%s748_s3 + $0x20] sm:$0xff]   ;;  %v612_v11 = vld [vmem:[%s746_s1 + $0x8] sm:$0xff]   ;;  %v618_v12 = vld [vmem:[%s748_s3 + $0x18] sm:$0xff]  }
   0xf   : > { %577 = vmatpush3.bf16.msra.mxu1 %v614_v4  ;;  %v613_v13 = vld [vmem:[%s746_s1] sm:$0xff]   ;;  %v619_v14 = vld [vmem:[%s748_s3 + $0x10] sm:$0xff]   ;;  %v620_v16 = vld [vmem:[%s748_s3 + $0x8] sm:$0xff]  }
  0x10   : > { %578 = vmatprep.subr.bf16.mxu1 %v634_v1  ;;  %v221_v15 = vld [vmem:[%s215_s26] sm:$0xf] }
  0x11   : > { %559 = vmatpush3.bf16.msra.mxu0 %v607_v2  ;;  %v621_v17 = vld [vmem:[%s748_s3] sm:$0xff]  }
  0x12   : > { %560 = vmatprep.subr.bf16.mxu0 %v634_v1  ;;  %v518_v18 = vld [vmem:[%s747_s2] ss:$0 sm:$0xff] }
  0x13   : > { %579 = vmatpush3.bf16.msra.mxu1 %v615_v6  ;;  %v527_v26 = vld [vmem:[%s749_s4] ss:$0 sm:$0xff] }
  0x14   : > { %580 = vmatprep.subr.bf16.mxu1 %v634_v1 }
  0x15   : > { %561 = vmatpush3.bf16.msra.mxu0 %v608_v3 }
  0x16   : > { %562 = vmatprep.subr.bf16.mxu0 %v634_v1 }
  0x17   : > { %581 = vmatpush3.bf16.msra.mxu1 %v616_v8 }
  0x18   : > { %582 = vmatprep.subr.bf16.mxu1 %v634_v1 }
  0x19   : > { %563 = vmatpush3.bf16.msra.mxu0 %v609_v5 }
  0x1a   : > { %564 = vmatprep.subr.bf16.mxu0 %v634_v1 }
  0x1b   : > { %583 = vmatpush3.bf16.msra.mxu1 %v617_v10 }
  0x1c   : > { %584 = vmatprep.subr.bf16.mxu1 %v634_v1 }
  0x1d   : > { %565 = vmatpush3.bf16.msra.mxu0 %v610_v7 }
  0x1e   : > { %566 = vmatprep.subr.bf16.mxu0 %v634_v1 }
  0x1f   : > { %585 = vmatpush3.bf16.msra.mxu1 %v618_v12 }
  0x20   : > { %586 = vmatprep.subr.bf16.mxu1 %v634_v1 }
  0x21   : > { %567 = vmatpush3.bf16.msra.mxu0 %v611_v9 }
  0x22   : > { %568 = vmatprep.subr.bf16.mxu0 %v634_v1 }
  0x23   : > { %587 = vmatpush3.bf16.msra.mxu1 %v619_v14 }
  0x24   : > { %588 = vmatprep.subr.bf16.mxu1 %v634_v1 }
  0x25   : > { %569 = vmatpush3.bf16.msra.mxu0 %v612_v11 }
  0x26   : > { %570 = vmatprep.subr.bf16.mxu0 %v634_v1 }
  0x27   : > { %589 = vmatpush3.bf16.msra.mxu1 %v620_v16 }
  0x28   : > { %590 = vmatprep.subr.bf16.mxu1 %v634_v1 }
  0x29   : > { %571 = vmatpush3.bf16.msra.mxu0 %v613_v13 }
  0x2b   : > { %591 = vmatpush3.bf16.msra.mxu1 %v621_v17 }
  0x2c   : > { %573 = vmatmul.mubr.bf16.vlgmr.msra.gmra.mxu0 %v221_v15 }
  0xec   : > { %v327_v19 = vpop.f32.mrf.mxu0 }
  0xed   : > { %v328_v20 = vadd.f32 %v518_v18, %v327_v19 }
  0xee   : > { %v574_v21 = vpop.f32.mrf.mxu0 }
  0xef   : > { %v333_v22 = vmax.f32 %v328_v20, 0.0 }
  0xf0   : > { %v330_v23 = vpop.f32.mrf.mxu0 }
  0xf1   : > { %v334_v24 = vpack.c.bf16 %v333_v22, %v333_v22 }
  0xf2   : > { %v575_v25 = vpop.f32.mrf.mxu0 }
  0xf3   : > { %593 = vmatmul.mubr.bf16.vlgmr.msra.gmra.mxu1 %v334_v24 }
 0x1b3   : > { %v440_v27 = vpop.f32.mrf.mxu1 }
 0x1b4   : > { %v441_v28 = vadd.f32 %v527_v26, %v440_v27 }
 0x1b5   : > { %v594_v29 = vpop.f32.mrf.mxu1 }
 0x1b6   : > { %446 = vmax.xlane.f32.xlu0 %v441_v28 }
 0x1b7   : > { %v443_v30 = vpop.f32.mrf.mxu1 }
 0x1b9   : > { %v595_v31 = vpop.f32.mrf.mxu1 }
 0x23f   : > { %v447_v32 = vpop.xlane.xlu0 %446 }
 0x240   : > { %v448_v33 = vsub.f32 %v441_v28, %v447_v32 }
 0x242   : > { %v449_v34 = vmul.f32 1.442695, %v448_v33 }
 0x244   : > { %622 = vpow2.f32 %v449_v34 }
 0x251   : > { %v623_v35 = vpop.eup %622 }
 0x252   : > { %451 = vadd.xlane.f32.xlu0 %v623_v35 }
 0x2db   : > { %v452_v36 = vpop.xlane.xlu0 %451 }
 0x2dc   : > { %624 = vlog2.f32 %v452_v36 }
 0x2e9   : > { %v625_v37 = vpop.eup %624 }
 0x2ea   : > { %v454_v38 = vmul.f32 0.6931472, %v625_v37 }
 0x2ec   : > { %v455_v39 = vadd.f32 %v454_v38, %v447_v32 }
 0x2ee   : > { %v456_v40 = vsub.f32 %v441_v28, %v455_v39 }
 0x2f0   : > { %457 = vst [vmem:[%s219_s15] sm:$0xff] %v456_v40 }
 0x2f1 PF: > { %s15_s18 = sadd.s32 1, %s632_s18  }
 0x2f2   : > { %p12_p4 = scmp.ge.s32.totalorder %s15_s18, 4  }
 0x2f4   :  { %14 = sbr.rel (!%p12_p4) target bundleno = 1 (0x1), region = 70 }

</bundles_post_ra>
